<compile_context>
chip_gen: v7x
topology: tpu7x:2x2x1
jax: 0.10.0
libtpu: 0.0.40
codegen_flags: <defaults>
</compile_context>

<pallas_src>
import numpy as np
import jax
import jax.numpy as jnp
from jax import lax
from jax.experimental import pallas as pl
from jax.experimental.pallas import tpu as pltpu


_LANE = 128
_SUBLANE = 8
_UNIT = _LANE * _SUBLANE      # 1024: samples in one fully packed int32 vreg


def _select_defaults():
    """Return (max_tile_samples, vmem_limit_bytes, num_splits) per TPU gen."""
    try:
        cap = int(pltpu.get_tpu_info().vmem_capacity_bytes)
    except Exception:
        cap = 64 * 1024 * 1024          # unknown environment -> assume v7x-like
    if cap >= 96 * 1024 * 1024:
        # v5e / v6e: 128 MiB VMEM, single TensorCore -> big tiles, no split.
        return 256 * 1024, 96 * 1024 * 1024, 1
    if cap >= 48 * 1024 * 1024:
        # v7x: 64 MiB VMEM per TensorCore, 2 TensorCores -> 2-way parallel split.
        return 64 * 1024, 40 * 1024 * 1024, 2
    # tiny-VMEM fallback (older parts): small tiles, conservative limit.
    return 16 * 1024, 12 * 1024 * 1024, 1


def _cls_report_kernel(pred_ref, true_ref, out_ref):
    """Accumulate per-class TP / predicted-positive / support int32 counts.

    pred_ref/true_ref: (8, tc) int32 sublane-dense label blocks.  Padding is
    sentinelized on the host (pred pad = -1, true pad = -2), so padded samples
    never match any class or each other and no masking is needed here.
    out_ref: resident (3, c_pad, 128) int32 accumulator block (block index is
    constant along the "arbitrary" grid axis -> written back once per split).
    """
    i = pl.program_id(1)

    @pl.when(i == 0)
    def _init():
        out_ref[...] = jnp.zeros_like(out_ref)

    c_pad = out_ref.shape[1]
    pred = pred_ref[...]                         # (8, tc) int32
    true = true_ref[...]                         # (8, tc) int32

    # classes on the leading axis; labels stay in their packed (8, tc) layout
    class_ids = lax.broadcasted_iota(jnp.int32, (c_pad, 1, 1), 0)
    pred_oh = pred[None, :, :] == class_ids      # (c_pad, 8, tc) bool
    true_oh = true[None, :, :] == class_ids      # (c_pad, 8, tc) bool
    tp_oh = pred_oh & true_oh                    # (c_pad, 8, tc) bool

    def count(x):                                # -> (c_pad, 1) int32
        return x.astype(jnp.int32).sum(axis=2).sum(axis=1, keepdims=True)

    # (c_pad, 1) counts broadcast across the 128-lane output rows; the host
    # reads lane 0.  int32 per split (exact up to ~2.1e9 samples/class/split).
    out_ref[0] += count(tp_oh)
    out_ref[1] += count(pred_oh)
    out_ref[2] += count(true_oh)


def cls_report(predict_labels, true_labels, target_names,
               max_tile=None, num_splits=None, vmem_limit_bytes=None,
               validate_labels=False):
    """Pallas equivalent of classification_report(true, pred, output_dict=True)."""
    C = len(target_names)
    c_pad = max(_SUBLANE, ((C + _SUBLANE - 1) // _SUBLANE) * _SUBLANE)
    n = int(predict_labels.shape[0])

    d_tile, d_vmem, d_splits = _select_defaults()
    max_tile = d_tile if max_tile is None else int(max_tile)
    num_splits = d_splits if num_splits is None else max(1, int(num_splits))
    vmem_limit_bytes = d_vmem if vmem_limit_bytes is None else int(vmem_limit_bytes)

    pred = jnp.asarray(predict_labels).astype(jnp.int32).reshape(-1)
    true = jnp.asarray(true_labels).astype(jnp.int32).reshape(-1)

    if validate_labels:
        lo = int(jnp.minimum(jnp.min(pred), jnp.min(true)))
        hi = int(jnp.maximum(jnp.max(pred), jnp.max(true)))
        assert 0 <= lo and hi < C, f"labels outside [0, {C}): min={lo} max={hi}"

    # Tile size in samples: a multiple of 1024 (8 sublanes x 128 lanes of
    # int32), clamped so tiny inputs use a single small tile.
    max_tile = max(_UNIT, (max_tile // _UNIT) * _UNIT)
    n_up = ((n + _UNIT - 1) // _UNIT) * _UNIT
    tile = min(max_tile, n_up)

    # Pad to a whole number of tiles per split with sentinels, so every grid
    # step processes a unique, fully in-bounds block and no masking is needed.
    chunk = tile * num_splits
    n_pad = ((n + chunk - 1) // chunk) * chunk
    pred = jnp.pad(pred, (0, n_pad - n), constant_values=-1)
    true = jnp.pad(true, (0, n_pad - n), constant_values=-2)

    # Sublane-dense view: (8, n_pad // 8) int32 (contiguous reshape).
    cols = n_pad // _SUBLANE
    tc = tile // _SUBLANE
    pred2 = pred.reshape(_SUBLANE, cols)
    true2 = true.reshape(_SUBLANE, cols)

    num_tiles = n_pad // tile
    tiles_per_split = num_tiles // num_splits

    def lbl_map(p, i):
        return (0, p * tiles_per_split + i)

    grid_spec = pltpu.PrefetchScalarGridSpec(
        num_scalar_prefetch=0,
        grid=(num_splits, tiles_per_split),
        in_specs=[pl.BlockSpec((_SUBLANE, tc), lbl_map),
                  pl.BlockSpec((_SUBLANE, tc), lbl_map)],
        out_specs=pl.BlockSpec((None, 3, c_pad, _LANE),
                               lambda p, i: (p, 0, 0, 0)),
    )

    counts = pl.pallas_call(
        _cls_report_kernel,
        out_shape=jax.ShapeDtypeStruct((num_splits, 3, c_pad, _LANE), jnp.int32),
        grid_spec=grid_spec,
        compiler_params=pltpu.CompilerParams(
            dimension_semantics=("parallel", "arbitrary"),
            vmem_limit_bytes=vmem_limit_bytes),
    )(pred2, true2)

    counts = np.asarray(jax.block_until_ready(counts)).astype(np.int64).sum(axis=0)
    tp = counts[0, :C, 0].astype(np.float64)
    pp = counts[1, :C, 0].astype(np.float64)
    support = counts[2, :C, 0].astype(np.float64)

    # sklearn default: zero_division -> 0.0  (O(C) host-side scalar math)
    precision = np.where(pp > 0, tp / np.maximum(pp, 1.0), 0.0)
    recall = np.where(support > 0, tp / np.maximum(support, 1.0), 0.0)
    denom = precision + recall
    f1 = np.where(denom > 0, 2.0 * precision * recall / np.maximum(denom, 1e-300), 0.0)

    total = float(support.sum())
    report = {}
    for idx, name in enumerate(target_names):
        report[name] = {
            "precision": float(precision[idx]),
            "recall": float(recall[idx]),
            "f1-score": float(f1[idx]),
            "support": float(support[idx]),
        }
    report["accuracy"] = float(tp.sum()) / total
    report["macro avg"] = {
        "precision": float(precision.mean()),
        "recall": float(recall.mean()),
        "f1-score": float(f1.mean()),
        "support": total,
    }
    report["weighted avg"] = {
        "precision": float((precision * support).sum() / total),
        "recall": float((recall * support).sum() / total),
        "f1-score": float((f1 * support).sum() / total),
        "support": total,
    }
    return report


def _numpy_reference(pred, true, target_names):
    pred = np.asarray(pred)
    true = np.asarray(true)
    C = len(target_names)
    rep = {}
    precs, recs, f1s, sups = [], [], [], []
    for c in range(C):
        tp = float(np.sum((pred == c) & (true == c)))
        pp = float(np.sum(pred == c))
        sup = float(np.sum(true == c))
        p = tp / pp if pp > 0 else 0.0
        r = tp / sup if sup > 0 else 0.0
        f = 2 * p * r / (p + r) if (p + r) > 0 else 0.0
        rep[target_names[c]] = {"precision": p, "recall": r,
                                "f1-score": f, "support": sup}
        precs.append(p); recs.append(r); f1s.append(f); sups.append(sup)
    precs, recs, f1s, sups = map(np.array, (precs, recs, f1s, sups))
    total = sups.sum()
    rep["accuracy"] = float(np.sum(pred == true)) / total
    rep["macro avg"] = {"precision": precs.mean(), "recall": recs.mean(),
                        "f1-score": f1s.mean(), "support": total}
    rep["weighted avg"] = {"precision": (precs * sups).sum() / total,
                           "recall": (recs * sups).sum() / total,
                           "f1-score": (f1s * sups).sum() / total,
                           "support": total}
    return rep


def _check(report, ref, target_names, tol=1e-6):
    for k in list(target_names) + ["macro avg", "weighted avg"]:
        for field in ["precision", "recall", "f1-score", "support"]:
            assert abs(report[k][field] - ref[k][field]) < tol, \
                (k, field, report[k][field], ref[k][field])
    assert abs(report["accuracy"] - ref["accuracy"]) < tol, \
        ("accuracy", report["accuracy"], ref["accuracy"])


if __name__ == "__main__":
    target_names = ["water", "forest", "urban", "crop"]
    C = len(target_names)

    key = jax.random.PRNGKey(0)
    k1, k2, k3, k4, k5, k6 = jax.random.split(key, 6)

    # --- check 1: small N, single tile, generation-default configuration ---
    N = 200
    true_labels = jax.random.randint(k1, (N,), 0, C, dtype=jnp.int32)
    noise = jax.random.randint(k2, (N,), 0, C, dtype=jnp.int32)
    flip = jax.random.bernoulli(k3, 0.3, (N,))
    predict_labels = jnp.where(flip, noise, true_labels).astype(jnp.int32)

    report = cls_report(predict_labels, true_labels, target_names)
    ref = _numpy_reference(np.asarray(predict_labels), np.asarray(true_labels),
                           target_names)
    _check(report, ref, target_names)

    # --- check 2: multi-tile, 2-way split, non-multiple max_tile (rounded to
    #     1024) and a sentinel-padded tail ---
    N2 = 5000
    true2 = jax.random.randint(k4, (N2,), 0, C, dtype=jnp.int32)
    noise2 = jax.random.randint(k5, (N2,), 0, C, dtype=jnp.int32)
    flip2 = jax.random.bernoulli(k6, 0.25, (N2,))
    pred2 = jnp.where(flip2, noise2, true2).astype(jnp.int32)

    report2 = cls_report(pred2, true2, target_names, max_tile=1000, num_splits=2)
    ref2 = _numpy_reference(np.asarray(pred2), np.asarray(true2), target_names)
    _check(report2, ref2, target_names)

    print("KERNEL_OK")
</pallas_src>

<mosaic_0001>
module attributes {stable_mosaic.version = 11 : i64} {
  func.func @_cls_report_kernel(%arg0: i32, %arg1: i32, %arg2: memref<8x128xi32, #tpu.memory_space<vmem>>, %arg3: memref<8x128xi32, #tpu.memory_space<vmem>>, %arg4: memref<1x3x8x128xi32, #tpu.memory_space<vmem>>) attributes {dimension_semantics = [#tpu.dimension_semantics<parallel>, #tpu.dimension_semantics<arbitrary>], iteration_bounds = array<i64: 2, 1>, scalar_prefetch = 0 : i64, scratch_operands = 0 : i64, tpu.core_type = #tpu.core_type<tc>, window_params = [{transform_indices = @transform_0, window_bounds = array<i64: 8, 128>}, {transform_indices = @transform_1, window_bounds = array<i64: 8, 128>}, {transform_indices = @transform_2, window_bounds = array<i64: 1, 3, 8, 128>}]} {
    %c0_i32 = arith.constant 0 : i32
    %0 = arith.cmpi eq, %arg1, %c0_i32 : i32
    %1 = arith.extui %0 : i1 to i32
    %c0_i32_0 = arith.constant 0 : i32
    %2 = arith.cmpi ne, %1, %c0_i32_0 : i32
    scf.if %2 {
      %c0_i32_31 = arith.constant 0 : i32
      %48 = vector.broadcast %c0_i32_31 : i32 to vector<3x8x128xi32>
      %c0_32 = arith.constant 0 : index
      %c0_33 = arith.constant 0 : index
      %c0_34 = arith.constant 0 : index
      %c0_35 = arith.constant 0 : index
      %49 = vector.load %arg4[%c0_32, %c0_33, %c0_34, %c0_35] : memref<1x3x8x128xi32, #tpu.memory_space<vmem>>, vector<1x3x8x128xi32>
      %50 = vector.shape_cast %49 : vector<1x3x8x128xi32> to vector<3x8x128xi32>
      %51 = vector.shape_cast %48 : vector<3x8x128xi32> to vector<1x3x8x128xi32>
      tpu.vector_store %arg4[%c0_32, %c0_33, %c0_34, %c0_35], %51 {strides = array<i32>} : memref<1x3x8x128xi32, #tpu.memory_space<vmem>>, vector<1x3x8x128xi32>,
    } else {
    }
    %c0 = arith.constant 0 : index
    %c0_1 = arith.constant 0 : index
    %3 = vector.load %arg2[%c0, %c0_1] : memref<8x128xi32, #tpu.memory_space<vmem>>, vector<8x128xi32>
    %c0_2 = arith.constant 0 : index
    %c0_3 = arith.constant 0 : index
    %4 = vector.load %arg3[%c0_2, %c0_3] : memref<8x128xi32, #tpu.memory_space<vmem>>, vector<8x128xi32>
    %5 = tpu.iota {dimensions = array<i32: 0>} : vector<8x1x1xi32>
    %6 = vector.shape_cast %3 : vector<8x128xi32> to vector<1x8x128xi32>
    %7 = vector.broadcast %6 : vector<1x8x128xi32> to vector<8x8x128xi32>
    %8 = vector.broadcast %5 : vector<8x1x1xi32> to vector<8x8x128xi32>
    %9 = arith.cmpi eq, %7, %8 : vector<8x8x128xi32>
    %10 = vector.shape_cast %4 : vector<8x128xi32> to vector<1x8x128xi32>
    %11 = vector.broadcast %10 : vector<1x8x128xi32> to vector<8x8x128xi32>
    %12 = vector.broadcast %5 : vector<8x1x1xi32> to vector<8x8x128xi32>
    %13 = arith.cmpi eq, %11, %12 : vector<8x8x128xi32>
    %14 = arith.andi %9, %13 : vector<8x8x128xi1>
    %c0_4 = arith.constant 0 : index
    %c0_5 = arith.constant 0 : index
    %c0_6 = arith.constant 0 : index
    %c0_7 = arith.constant 0 : index
    %15 = vector.load %arg4[%c0_4, %c0_5, %c0_6, %c0_7] : memref<1x3x8x128xi32, #tpu.memory_space<vmem>>, vector<1x1x8x128xi32>
    %16 = vector.shape_cast %15 : vector<1x1x8x128xi32> to vector<8x128xi32>
    %17 = arith.extui %14 : vector<8x8x128xi1> to vector<8x8x128xi32>
    %cst = arith.constant dense<0> : vector<8x8xi32>
    %18 = vector.multi_reduction <add>, %17, %cst [2] : vector<8x8x128xi32> to vector<8x8xi32>
    %cst_8 = arith.constant dense<0> : vector<8xi32>
    %19 = vector.multi_reduction <add>, %18, %cst_8 [1] : vector<8x8xi32> to vector<8xi32>
    %20 = vector.shape_cast %19 : vector<8xi32> to vector<8x1xi32>
    %21 = vector.broadcast %20 : vector<8x1xi32> to vector<8x128xi32>
    %22 = arith.addi %16, %21 : vector<8x128xi32>
    %c0_9 = arith.constant 0 : index
    %c0_10 = arith.constant 0 : index
    %c0_11 = arith.constant 0 : index
    %c0_12 = arith.constant 0 : index
    %23 = vector.load %arg4[%c0_9, %c0_10, %c0_11, %c0_12] : memref<1x3x8x128xi32, #tpu.memory_space<vmem>>, vector<1x1x8x128xi32>
    %24 = vector.shape_cast %23 : vector<1x1x8x128xi32> to vector<8x128xi32>
    %25 = vector.shape_cast %22 : vector<8x128xi32> to vector<1x1x8x128xi32>
    tpu.vector_store %arg4[%c0_9, %c0_10, %c0_11, %c0_12], %25 {strides = array<i32>} : memref<1x3x8x128xi32, #tpu.memory_space<vmem>>, vector<1x1x8x128xi32>,
    %c0_13 = arith.constant 0 : index
    %c1 = arith.constant 1 : index
    %c0_14 = arith.constant 0 : index
    %c0_15 = arith.constant 0 : index
    %26 = vector.load %arg4[%c0_13, %c1, %c0_14, %c0_15] : memref<1x3x8x128xi32, #tpu.memory_space<vmem>>, vector<1x1x8x128xi32>
    %27 = vector.shape_cast %26 : vector<1x1x8x128xi32> to vector<8x128xi32>
    %28 = arith.extui %9 : vector<8x8x128xi1> to vector<8x8x128xi32>
    %cst_16 = arith.constant dense<0> : vector<8x8xi32>
    %29 = vector.multi_reduction <add>, %28, %cst_16 [2] : vector<8x8x128xi32> to vector<8x8xi32>
    %cst_17 = arith.constant dense<0> : vector<8xi32>
    %30 = vector.multi_reduction <add>, %29, %cst_17 [1] : vector<8x8xi32> to vector<8xi32>
    %31 = vector.shape_cast %30 : vector<8xi32> to vector<8x1xi32>
    %32 = vector.broadcast %31 : vector<8x1xi32> to vector<8x128xi32>
    %33 = arith.addi %27, %32 : vector<8x128xi32>
    %c0_18 = arith.constant 0 : index
    %c1_19 = arith.constant 1 : index
    %c0_20 = arith.constant 0 : index
    %c0_21 = arith.constant 0 : index
    %34 = vector.load %arg4[%c0_18, %c1_19, %c0_20, %c0_21] : memref<1x3x8x128xi32, #tpu.memory_space<vmem>>, vector<1x1x8x128xi32>
    %35 = vector.shape_cast %34 : vector<1x1x8x128xi32> to vector<8x128xi32>
    %36 = vector.shape_cast %33 : vector<8x128xi32> to vector<1x1x8x128xi32>
    tpu.vector_store %arg4[%c0_18, %c1_19, %c0_20, %c0_21], %36 {strides = array<i32>} : memref<1x3x8x128xi32, #tpu.memory_space<vmem>>, vector<1x1x8x128xi32>,
    %c0_22 = arith.constant 0 : index
    %c2 = arith.constant 2 : index
    %c0_23 = arith.constant 0 : index
    %c0_24 = arith.constant 0 : index
    %37 = vector.load %arg4[%c0_22, %c2, %c0_23, %c0_24] : memref<1x3x8x128xi32, #tpu.memory_space<vmem>>, vector<1x1x8x128xi32>
    %38 = vector.shape_cast %37 : vector<1x1x8x128xi32> to vector<8x128xi32>
    %39 = arith.extui %13 : vector<8x8x128xi1> to vector<8x8x128xi32>
    %cst_25 = arith.constant dense<0> : vector<8x8xi32>
    %40 = vector.multi_reduction <add>, %39, %cst_25 [2] : vector<8x8x128xi32> to vector<8x8xi32>
    %cst_26 = arith.constant dense<0> : vector<8xi32>
    %41 = vector.multi_reduction <add>, %40, %cst_26 [1] : vector<8x8xi32> to vector<8xi32>
    %42 = vector.shape_cast %41 : vector<8xi32> to vector<8x1xi32>
    %43 = vector.broadcast %42 : vector<8x1xi32> to vector<8x128xi32>
    %44 = arith.addi %38, %43 : vector<8x128xi32>
    %c0_27 = arith.constant 0 : index
    %c2_28 = arith.constant 2 : index
    %c0_29 = arith.constant 0 : index
    %c0_30 = arith.constant 0 : index
    %45 = vector.load %arg4[%c0_27, %c2_28, %c0_29, %c0_30] : memref<1x3x8x128xi32, #tpu.memory_space<vmem>>, vector<1x1x8x128xi32>
    %46 = vector.shape_cast %45 : vector<1x1x8x128xi32> to vector<8x128xi32>
    %47 = vector.shape_cast %44 : vector<8x128xi32> to vector<1x1x8x128xi32>
    tpu.vector_store %arg4[%c0_27, %c2_28, %c0_29, %c0_30], %47 {strides = array<i32>} : memref<1x3x8x128xi32, #tpu.memory_space<vmem>>, vector<1x1x8x128xi32>,
    return
  }
  func.func @transform_0(%arg0: i32, %arg1: i32) -> (i32, i32) {
    %c1_i32 = arith.constant 1 : i32
    %0 = arith.muli %arg0, %c1_i32 : i32
    %1 = arith.addi %0, %arg1 : i32
    %c0_i32 = arith.constant 0 : i32
    %c0_i32_0 = arith.constant 0 : i32
    return %c0_i32, %1 : i32, i32
  }
  func.func @transform_1(%arg0: i32, %arg1: i32) -> (i32, i32) {
    %c1_i32 = arith.constant 1 : i32
    %0 = arith.muli %arg0, %c1_i32 : i32
    %1 = arith.addi %0, %arg1 : i32
    %c0_i32 = arith.constant 0 : i32
    %c0_i32_0 = arith.constant 0 : i32
    return %c0_i32, %1 : i32, i32
  }
  func.func @transform_2(%arg0: i32, %arg1: i32) -> (i32, i32, i32, i32) {
    %c0_i32 = arith.constant 0 : i32
    %c0_i32_0 = arith.constant 0 : i32
    %c0_i32_1 = arith.constant 0 : i32
    %c0_i32_2 = arith.constant 0 : i32
    return %arg0, %c0_i32, %c0_i32_0, %c0_i32_1 : i32, i32, i32, i32
  }
}

</mosaic_0001>

<bundles_post_ra>
// kernel: tpu_custom_call.1
= control target key start
LH: loop header
LB: loop body
LE: loop exit
PB: predicated region body
PF: predicated region fallthrough
CT: control target
= control target key end

     0   :  { %7 = vsyncpa [#allocation3], 0  ;;  %s1526_s0 = inlined_call_operand.hbm [shape: s32[8,256], index: 0, kind: input, shape index: {}]   ;;  %s1527_s1 = inlined_call_operand.hbm [shape: s32[8,256], index: 1, kind: input, shape index: {}]   ;;  %s1528_s2 = inlined_call_operand.hbm [shape: s32[2,3,8,128], index: 2, kind: output, shape index: {}]  }
   0x1   :  { %9 = vsyncpa [#allocation3 + $0x1], 0 }
   0x2   :  { %10 = vsyncpa [#allocation6], 0 }
   0x3   :  { %12 = vsyncpa [#allocation6 + $0x1], 0 }
   0x4   :  { %13 = vsyncpa [#allocation4], 0 }
   0x5   :  { %15 = vsyncpa [#allocation4 + $0x1], 0  ;;  %s1117_s9 = smov 0   ;;  %s1119_s10 = smov 0  }
   0x6   :  { %s1121_s11 = smov 0   ;;  %s1123_s12 = smov 0  }
   0x7   :  { %s1125_s13 = smov 0   ;;  %s1127_s14 = smov 0  }
   0x8 LB: > { %s858_s15 = sadd.s32 4294967295, %s1094_s14   ;;  %s859_s16 = sadd.s32 4294967294, %s1094_s14   ;;  %s1094_s14 = sphi %s1127_s14, %s21_s14   ;;  %s1090_s13 = sphi %s1125_s13, %s1550_s13   ;;  %s1086_s12 = sphi %s1123_s12, %s1549_s12   ;;  %s1082_s11 = sphi %s1121_s11, %s1548_s11   ;;  %s1078_s10 = sphi %s1119_s10, %s1547_s10   ;;  %s1074_s9 = sphi %s1117_s9, %s1546_s9  }
   0x9   : > { %s33_s17 = sadd.s32 1, %s1090_s13  ;;  %s42_s18 = sadd.s32 1, %s1082_s11 }
   0xa   : > { %p35_p0 = scmp.ge.s32.totalorder %s33_s17, 2  ;;  %p49_p1 = scmp.ne.s32.totalorder %s1082_s11, %s1078_s10 }
   0xb   : > { %p50_p2 = scmp.eq.s32.totalorder %s1094_s14, 0  ;;  %p55_p3 = scmp.ne.s32.totalorder %s1078_s10, %s1074_s9 }
   0xc   : > { %s1552_s17 = smov (%p35_p0, %s33_s17), 0  ;;  %p56_p5 = scmp.eq.s32.totalorder %s858_s15, 0 }
   0xd   : > { %p1158_p4 = por %p50_p2, %p49_p1  ;;  %s39_s20 = ssub.s32 %s1090_s13, %s1552_s17 }
   0xe   : > { %p107_p6 = scmp.eq.s32.totalorder %s858_s15, 1  ;;  %p40_p7 = scmp.eq.s32.totalorder %s39_s20, 0 }
   0xf   : > { %p1164_p8 = por %p56_p5, %p55_p3  ;;  %p113_p10 = scmp.eq.s32.totalorder %s859_s16, 1 }
  0x10   : > { %p1168_p9 = por %p107_p6, %p49_p1  ;;  %p895_p13 = scmp.lt.s32.totalorder %s1094_s14, 2 }
  0x11   : > { %s1532_s21 = scalar_select %p1164_p8, 1, 0 }
  0x12   : > { %s1533_s22 = scalar_select %p1168_p9, 1, 0 }
  0x13   : > { %s1173_s23 = scalar_select %p40_p7, %s1082_s11, %s42_s18  }
  0x14   : > { %p1175_p11 = por %p113_p10, %p55_p3  ;;  %s1182_s25 = sand.u32 1, %s1082_s11  }
  0x15   : > { %s862_s26 = sshll.u32 %s1182_s25, 3  ;;  %s863_s27 = sshll.u32 %s1090_s13, 7 }
  0x16   : > { %s1534_s24 = scalar_select %p1175_p11, 1, 0 }
  0x17   : > { %s1191_s30 = scalar_lea.hbm %s1526_s0, %s863_s27  ;;  %s137_s3 = scalar_lea.vmem [#allocation2], %s862_s26 }
  0x18   : > { %s145_s4 = sshll.u32 %s137_s3, 4  ;;  %p1199_p0 = pnand %p895_p13, %p1158_p4  ;;  %s1195_s4 = int_to_ptr.vmem [resolvable:$true] %s145_s4 }
  0x19   : > { %s134_s6 = scalar_lea.sflag [#allocation3], %s1182_s25  ;;  %s948_s7 = scalar_lea.hbm %s1191_s30, 128 }
  0x1a   : > { %p949_p3 = scmp.ne.s32.totalorder %s1191_s30, %s948_s7  ;;  %p950_p5 = pneg %p1199_p0 }
  0x1b   : > { %s953_s16 = scalar_lea.hbm %s1526_s0, 256  ;;  %p954_p4 = scmp.lt.u32.totalorder %s1191_s30, %s1526_s0 }
  0x1c   : > { %p951_p6 = pnand %p950_p5, %p949_p3  ;;  %p955_p10 = scmp.lt.u32.totalorder %s953_s16, %s948_s7 }
  0x1d   : > { %p957_p12 = scmp.lt.u32.totalorder %s948_s7, %s1191_s30 }
  0x1e   : > { %p952_p7 = pneg %p951_p6  ;;  %p956_p13 = por %p955_p10, %p954_p4 }
  0x20   : > { %p958_p1 = por %p957_p12, %p956_p13 }
  0x22   : > { %p959_p2 = pnand %p958_p1, %p952_p7 }
  0x24   : > { %962 = shalt.err (!%p959_p2)
}
  0x25   : > { %s963_s20 = scalar_lea.vmem %s1195_s4, 128  ;;  %s1096_s28 = smov [#allocation2]  }
  0x26   : > { %p964_p3 = scmp.ne.s32.totalorder %s1195_s4, %s963_s20  ;;  %s968_s29 = sshll.u32 %s1096_s28, 4  ;;  %s969_s29 = int_to_ptr.vmem [resolvable:$false] %s968_s29 }
  0x27   : > { %s970_s3 = scalar_lea.vmem %s969_s29, 256  ;;  %p971_p9 = scmp.lt.s32.totalorder %s1195_s4, %s969_s29 }
  0x28   : > { %p966_p6 = pnand %p964_p3, %p950_p5  ;;  %p972_p4 = scmp.lt.s32.totalorder %s970_s3, %s963_s20 }
  0x2a   : > { %p967_p11 = pneg %p966_p6  ;;  %p973_p10 = por %p972_p4, %p971_p9 }
  0x2c   : > { %p974_p12 = pnand %p973_p10, %p967_p11 }
  0x2e   : > { %977 = shalt.err (!%p974_p12)
}
  0x2f   : > { %887 = dma.hbm_to_vmem [thread:$0]  (!%p1199_p0), %s1191_s30, 128, %s1195_s4, %s134_s6  }
  0x30   : > { %p1536_p1 = scmp.lt.s32.totalorder %s1094_s14, 3  ;;  %p1537_p2 = scmp.ge.s32.totalorder %s1094_s14, 1 }
  0x31   : > { %s1244_s16 = scalar_lea.hbm %s1527_s1, %s863_s27  ;;  %s156_s18 = scalar_lea.vmem [#allocation5], %s862_s26 }
  0x32   : > { %p1235_p7 = pnand %p1537_p2, %p1536_p1  ;;  %s164_s19 = sshll.u32 %s156_s18, 4  ;;  %s165_s19 = int_to_ptr.vmem [resolvable:$true] %s164_s19 }
  0x33   : > { %s153_s30 = scalar_lea.sflag [#allocation6], %s1182_s25  ;;  %s978_s4 = scalar_lea.hbm %s1244_s16, 128 }
  0x34   : > { %s1538_s7 = scalar_select %p1235_p7, 1, 0 }
  0x35   : > { %p979_p9 = scmp.ne.s32.totalorder %s1244_s16, %s978_s4  ;;  %s983_s27 = scalar_lea.hbm %s1527_s1, 256 }
  0x36   : > { %p984_p3 = scmp.lt.u32.totalorder %s1244_s16, %s1527_s1  ;;  %p985_p6 = scmp.lt.u32.totalorder %s983_s27, %s978_s4 }
  0x37   : > { %p981_p11 = pnand %p979_p9, %p950_p5  ;;  %p987_p10 = scmp.lt.u32.totalorder %s978_s4, %s1244_s16 }
  0x38   : > { %p986_p4 = por %p985_p6, %p984_p3 }
  0x39   : > { %p982_p13 = pneg %p981_p11 }
  0x3a   : > { %p988_p12 = por %p987_p10, %p986_p4 }
  0x3c   : > { %p989_p1 = pnand %p988_p12, %p982_p13 }
  0x3e   : > { %992 = shalt.err (!%p989_p1)
}
  0x3f   : > { %s993_s25 = scalar_lea.vmem %s165_s19, 128  ;;  %s1097_s26 = smov [#allocation5]  }
  0x40   : > { %p994_p2 = scmp.ne.s32.totalorder %s165_s19, %s993_s25  ;;  %s998_s3 = sshll.u32 %s1097_s26, 4  ;;  %s999_s3 = int_to_ptr.vmem [resolvable:$false] %s998_s3 }
  0x41   : > { %s1000_s8 = scalar_lea.vmem %s999_s3, 256  ;;  %p1001_p8 = scmp.lt.s32.totalorder %s165_s19, %s999_s3 }
  0x42   : > { %p996_p9 = pnand %p994_p2, %p950_p5  ;;  %p1002_p7 = scmp.lt.s32.totalorder %s1000_s8, %s993_s25 }
  0x44   : > { %p997_p11 = pneg %p996_p9  ;;  %p1003_p3 = por %p1002_p7, %p1001_p8 }
  0x46   : > { %p1004_p6 = pnand %p1003_p3, %p997_p11 }
  0x48   : > { %1007 = shalt.err (!%p1004_p6)
}
  0x49   : > { %890 = dma.hbm_to_vmem [thread:$0]  (!%p1199_p0), %s1244_s16, 128, %s165_s19, %s153_s30  }
  0x4a   : > { %p1539_p13 = scmp.ne.s32.totalorder %s1538_s7, 0 }
  0x4b   : > { %s1271_s15 = sand.u32 (!%p1539_p13), 1, %s1078_s10   ;;  %p1540_p5 = scmp.ne.s32.totalorder (!%p1539_p13), %s1532_s21, 0 }
  0x4c   : > { %173 = sbr.rel (%p1539_p13) target bundleno = 508 (0x1fc), region = 28  ;;  %s867_s18 = sshll.u32 (!%p1539_p13), %s1271_s15, 3 }
  0x4d   : > { %s176_s4 = scalar_lea.sflag (!%p1539_p13), [#allocation3], %s1271_s15  ;;  %s179_s6 = scalar_lea.vmem (!%p1539_p13), [#allocation2], %s867_s18 }
  0x53   : > { %1061 = dma.done.wait (%p1540_p5), %s176_s4, 128  }
  0x54   : > { %1063 = vsyncadd (%p1540_p5), %s176_s4, 4294967168  ;;  %s185_s5 = scalar_lea.sflag [#allocation6], %s1271_s15  ;;  %s188_s16 = scalar_lea.vmem [#allocation5], %s867_s18 }
  0x55   : > { %1065 = dma.done.wait (%p1540_p5), %s185_s5, 128  }
  0x56   : > { %1067 = vsyncadd (%p1540_p5), %s185_s5, 4294967168  ;;  %v1284_v0 = vld [vmem:[%s188_s16] sm:$0xff]  ;;  %v1286_v1 = vld [vmem:[%s179_s6] sm:$0xff]  ;;  %v1098_v2 = vmov 0   ;;  %s876_s21 = smul.u32 24, %s1271_s15  ;;  %p1543_p0 = scmp.ne.s32.totalorder %s1533_s22, 0 }
  0x57   : > { %vm233_vm0 = vcmp.eq.s32.totalorder %v1284_v0, 0  ;;  %vm225_vm1 = vcmp.eq.s32.totalorder %v1286_v1, 0  ;;  %vm226_vm2 = vcmp.eq.s32.totalorder %v1286_v1, 1  ;;  %vm234_vm3 = vcmp.eq.s32.totalorder %v1284_v0, 1  ;;  %s877_s7 = smul.u32 384, %s1086_s12  ;;  %s739_s12 = scalar_lea.sflag [#allocation4], %s1271_s15 }
  0x58   : > { %v1293_v3 = vsel %vm233_vm0, 1, %v1098_v2  ;;  %v420_v4 = vsel %vm225_vm1, 1, %v1098_v2  ;;  %vm241_vm4 = vmand %vm225_vm1, %vm233_vm0  ;;  %v421_v5 = vsel %vm226_vm2, 1, %v1098_v2  ;;  %v1300_v11 = vsel %vm234_vm3, 1, %v1098_v2  ;;  %s213_s19 = scalar_lea.vmem [#allocation7], %s876_s21  ;;  %s1099_s25 = smov [#allocation7]  }
  0x59   : > { %v589_v6 = vshrl.u32 %v1293_v3, 16  ;;  %v429_v7 = vshrl.u32 %v420_v4, 16  ;;  %v441_v8 = vshrl.u32 %v421_v5, 16  ;;  %v250_v9 = vsel %vm241_vm4, 1, %v1098_v2  ;;  %vm242_vm5 = vmand %vm226_vm2, %vm234_vm3  ;;  %s752_s30 = sshll.u32 %s213_s19, 4  ;;  %s1475_s28 = scalar_lea.hbm %s1528_s2, %s877_s7  ;;  %s1477_s30 = int_to_ptr.vmem [resolvable:$true] %s752_s30 }
  0x5a   : > { %v259_v10 = vshrl.u32 %v250_v9, 16  ;;  %v251_v12 = vsel %vm242_vm5, 1, %v1098_v2  ;;  %vm227_vm6 = vcmp.eq.s32.totalorder %v1286_v1, 2  ;;  %vm235_vm7 = vcmp.eq.s32.totalorder %v1284_v0, 2  ;;  %s1008_s29 = scalar_lea.vmem %s1477_s30, 384  ;;  %s1012_s26 = sshll.u32 %s1099_s25, 4  ;;  %s1013_s26 = int_to_ptr.vmem [resolvable:$false] %s1012_s26 }
  0x5b   : > { %v591_v13 = vcvt.s32.f32 %v589_v6  ;;  %v431_v14 = vcvt.s32.f32 %v429_v7  ;;  %v443_v15 = vcvt.s32.f32 %v441_v8  ;;  %v601_v17 = vshrl.u32 %v1300_v11, 16  ;;  %vm243_vm8 = vmand %vm227_vm6, %vm235_vm7  ;;  %p1009_p8 = scmp.ne.s32.totalorder %s1477_s30, %s1008_s29  ;;  %s1014_s3 = scalar_lea.vmem %s1013_s26, 768 }
  0x5c   : > { %v261_v16 = vcvt.s32.f32 %v259_v10  ;;  %v271_v18 = vshrl.u32 %v251_v12, 16  ;;  %v1309_v19 = vsel %vm227_vm6, 1, %v1098_v2  ;;  %v252_v20 = vsel %vm243_vm8, 1, %v1098_v2  ;;  %p1015_p10 = scmp.lt.s32.totalorder %s1477_s30, %s1013_s26  ;;  %p1016_p12 = scmp.lt.s32.totalorder %s1014_s3, %s1008_s29 }
  0x5d   : > { %594 = vadd.xlane.f32.xlu0 %v591_v13  ;;  %434 = vadd.xlane.f32.xlu1 %v431_v14  ;;  %vm228_vm9 = vcmp.eq.s32.totalorder %v1286_v1, 3  ;;  %vm236_vm10 = vcmp.eq.s32.totalorder %v1284_v0, 3  ;;  %v603_v21 = vcvt.s32.f32 %v601_v17  ;;  %v453_v23 = vshrl.u32 %v1309_v19, 16  ;;  %p1010_p7 = pnand %p1009_p8, %p1543_p0 }
  0x5e   : > { %v273_v22 = vcvt.s32.f32 %v271_v18  ;;  %v283_v24 = vshrl.u32 %v252_v20, 16  ;;  %v1318_v25 = vsel %vm235_vm7, 1, %v1098_v2  ;;  %vm244_vm11 = vmand %vm228_vm9, %vm236_vm10  ;;  %v258_v29 = vand.u32 65535, %v250_v9  ;;  %p1017_p1 = por %p1016_p12, %p1015_p10 }
  0x5f   : > { %v455_v26 = vcvt.s32.f32 %v453_v23  ;;  %v613_v28 = vshrl.u32 %v1318_v25, 16  ;;  %v1326_v30 = vsel %vm244_vm11, 1, %v1098_v2  ;;  %v270_v33 = vand.u32 65535, %v251_v12  ;;  %p1011_p4 = pneg %p1010_p7 }
  0x60   : > { %v285_v27 = vcvt.s32.f32 %v283_v24  ;;  %v260_v32 = vcvt.s32.f32 %v258_v29  ;;  %v295_v34 = vshrl.u32 %v1326_v30, 16  ;;  %v428_v37 = vand.u32 65535, %v420_v4 }
  0x61   : > { %446 = vadd.xlane.f32.xlu1 %v443_v15  ;;  %264 = vadd.xlane.f32.xlu0 %v261_v16  ;;  %v615_v31 = vcvt.s32.f32 %v613_v28  ;;  %v272_v35 = vcvt.s32.f32 %v270_v33  ;;  %v440_v38 = vand.u32 65535, %v421_v5  ;;  %v1332_v39 = vsel %vm228_vm9, 1, %v1098_v2  ;;  %p1018_p2 = pnand %p1017_p1, %p1011_p4 }
  0x62   : > { %v297_v36 = vcvt.s32.f32 %v295_v34  ;;  %v588_v40 = vand.u32 65535, %v1293_v3  ;;  %vm229_vm12 = vcmp.eq.s32.totalorder %v1286_v1, 4  ;;  %vm237_vm13 = vcmp.eq.s32.totalorder %v1284_v0, 4 }
  0x63   : > { %vm232_vm14 = vcmp.eq.s32.totalorder %v1286_v1, 7  ;;  %v430_v41 = vcvt.s32.f32 %v428_v37  ;;  %v442_v42 = vcvt.s32.f32 %v440_v38  ;;  %v465_v43 = vshrl.u32 %v1332_v39, 16  ;;  %vm245_vm1 = vmand %vm229_vm12, %vm237_vm13 }
  0x64   : > { %vm240_vm15 = vcmp.eq.s32.totalorder %v1284_v0, 7  ;;  %v583_v44 = vsel %vm236_vm10, 1, %v1098_v2  ;;  %v590_v47 = vcvt.s32.f32 %v588_v40  ;;  %v600_v48 = vand.u32 65535, %v1300_v11 }
  0x65   : > { %606 = vadd.xlane.f32.xlu1 %v603_v21  ;;  %276 = vadd.xlane.f32.xlu0 %v273_v22  ;;  %vm1347_vm0 = vmand %vm232_vm14, %vm240_vm15  ;;  %v467_v46 = vcvt.s32.f32 %v465_v43  ;;  %v625_v49 = vshrl.u32 %v583_v44, 16  ;;  %v254_v50 = vsel %vm245_vm1, 1, %v1098_v2  ;;  %v282_v53 = vand.u32 65535, %v252_v20 }
  0x66   : > { %v602_v51 = vcvt.s32.f32 %v600_v48  ;;  %v307_v54 = vshrl.u32 %v254_v50, 16  ;;  %v424_v55 = vsel %vm229_vm12, 1, %v1098_v2  ;;  %vm230_vm2 = vcmp.eq.s32.totalorder %v1286_v1, 5 }
  0x67   : > { %v627_v52 = vcvt.s32.f32 %v625_v49  ;;  %vm238_vm3 = vcmp.eq.s32.totalorder %v1284_v0, 5  ;;  %v284_v56 = vcvt.s32.f32 %v282_v53  ;;  %v452_v58 = vand.u32 65535, %v1309_v19 }
  0x68   : > { %v309_v57 = vcvt.s32.f32 %v307_v54  ;;  %v477_v59 = vshrl.u32 %v424_v55, 16  ;;  %v584_v60 = vsel %vm237_vm13, 1, %v1098_v2  ;;  %vm246_vm4 = vmand %vm230_vm2, %vm238_vm3  ;;  %v612_v63 = vand.u32 65535, %v1318_v25 }
  0x69   : > { %458 = vadd.xlane.f32.xlu1 %v455_v26  ;;  %288 = vadd.xlane.f32.xlu0 %v285_v27  ;;  %v454_v61 = vcvt.s32.f32 %v452_v58  ;;  %v637_v3 = vshrl.u32 %v584_v60, 16  ;;  %v255_v4 = vsel %vm246_vm4, 1, %v1098_v2  ;;  %v294_v7 = vand.u32 65535, %v1326_v30 }
  0x6a   : > { %v479_v62 = vcvt.s32.f32 %v477_v59  ;;  %v614_v5 = vcvt.s32.f32 %v612_v63  ;;  %v319_v8 = vshrl.u32 %v255_v4, 16  ;;  %v425_v9 = vsel %vm230_vm2, 1, %v1098_v2 }
  0x6b   : > { %v639_v6 = vcvt.s32.f32 %v637_v3  ;;  %vm231_vm5 = vcmp.eq.s32.totalorder %v1286_v1, 6  ;;  %vm239_vm6 = vcmp.eq.s32.totalorder %v1284_v0, 6  ;;  %v296_v10 = vcvt.s32.f32 %v294_v7 }
  0x6c   : > { %v321_v11 = vcvt.s32.f32 %v319_v8  ;;  %v464_v12 = vand.u32 65535, %v1332_v39  ;;  %v489_v13 = vshrl.u32 %v425_v9, 16  ;;  %v585_v14 = vsel %vm238_vm3, 1, %v1098_v2  ;;  %vm247_vm7 = vmand %vm231_vm5, %vm239_vm6 }
  0x6d   : > { %618 = vadd.xlane.f32.xlu0 %v615_v31  ;;  %262 = vadd.xlane.f32.xlu1 %v260_v32  ;;  %v624_v17 = vand.u32 65535, %v583_v44  ;;  %v649_v18 = vshrl.u32 %v585_v14, 16  ;;  %v256_v19 = vsel %vm247_vm7, 1, %v1098_v2  ;;  %v306_v22 = vand.u32 65535, %v254_v50 }
  0x6e   : > { %v466_v15 = vcvt.s32.f32 %v464_v12  ;;  %v491_v16 = vcvt.s32.f32 %v489_v13  ;;  %v331_v23 = vshrl.u32 %v256_v19, 16  ;;  %v426_v24 = vsel %vm231_vm5, 1, %v1098_v2 }
  0x6f   : > { %v626_v20 = vcvt.s32.f32 %v624_v17  ;;  %v651_v21 = vcvt.s32.f32 %v649_v18  ;;  %v308_v25 = vcvt.s32.f32 %v306_v22  ;;  %v476_v27 = vand.u32 65535, %v424_v55 }
  0x70   : > { %v333_v26 = vcvt.s32.f32 %v331_v23  ;;  %v501_v28 = vshrl.u32 %v426_v24, 16  ;;  %v586_v29 = vsel %vm239_vm6, 1, %v1098_v2  ;;  %v636_v32 = vand.u32 65535, %v584_v60 }
  0x71   : > { %274 = vadd.xlane.f32.xlu0 %v272_v35  ;;  %300 = vadd.xlane.f32.xlu1 %v297_v36  ;;  %v478_v30 = vcvt.s32.f32 %v476_v27  ;;  %v661_v33 = vshrl.u32 %v586_v29, 16  ;;  %v257_v34 = vsel %vm1347_vm0, 1, %v1098_v2  ;;  %v318_v37 = vand.u32 65535, %v255_v4 }
  0x72   : > { %v503_v31 = vcvt.s32.f32 %v501_v28  ;;  %v638_v35 = vcvt.s32.f32 %v636_v32  ;;  %v343_v38 = vshrl.u32 %v257_v34, 16  ;;  %v427_v39 = vsel %vm232_vm14, 1, %v1098_v2 }
  0x73   : > { %v663_v36 = vcvt.s32.f32 %v661_v33  ;;  %v320_v40 = vcvt.s32.f32 %v318_v37  ;;  %v513_v43 = vshrl.u32 %v427_v39, 16  ;;  %v587_v44 = vsel %vm240_vm15, 1, %v1098_v2 }
  0x74   : > { %v673_v48 = vshrl.u32 %v587_v44, 16  ;;  %v330_v50 = vand.u32 65535, %v256_v19  ;;  %v660_v54 = vand.u32 65535, %v586_v29  ;;  %v342_v55 = vand.u32 65535, %v257_v34 }
  0x75   : > { %432 = vadd.xlane.f32.xlu0 %v430_v41  ;;  %444 = vadd.xlane.f32.xlu1 %v442_v42  ;;  %v345_v41 = vcvt.s32.f32 %v343_v38  ;;  %v488_v42 = vand.u32 65535, %v425_v9  ;;  %v354_v7 = vlaneseq  ;;  %vm388_vm8 = vcmask 1041409  }
  0x76   : > { %v675_v49 = vcvt.s32.f32 %v673_v48  ;;  %v662_v0 = vcvt.s32.f32 %v660_v54  ;;  %v344_v2 = vcvt.s32.f32 %v342_v55  ;;  %vm390_vm9 = vcmask 1042434  }
  0x77   : > { %v490_v45 = vcvt.s32.f32 %v488_v42  ;;  %vm392_vm10 = vcmask 1043459   ;;  %vm394_vm11 = vcmask 1044484   ;;  %vm396_vm12 = vcmask 1045509  }
  0x78   : > { %vm398_vm13 = vcmask 1046534   ;;  %vm400_vm14 = vcmask 1047559   ;;  %vm402_vm15 = vcmask 64512  }
  0x79   : > { %470 = vadd.xlane.f32.xlu0 %v467_v46  ;;  %592 = vadd.xlane.f32.xlu1 %v590_v47  ;;  %v515_v46 = vcvt.s32.f32 %v513_v43  ;;  %v648_v47 = vand.u32 65535, %v585_v14  ;;  %v357_v14 = vshrl.u32 %v354_v7, 7 }
  0x7b   : > { %v650_v1 = vcvt.s32.f32 %v648_v47 }
  0x7d   : > { %604 = vadd.xlane.f32.xlu0 %v602_v51  ;;  %630 = vadd.xlane.f32.xlu1 %v627_v52  ;;  %v500_v51 = vand.u32 65535, %v426_v24  ;;  %v332_v52 = vcvt.s32.f32 %v330_v50 }
  0x7f   : > { %v502_v53 = vcvt.s32.f32 %v500_v51 }
  0x81   : > { %286 = vadd.xlane.f32.xlu0 %v284_v56  ;;  %312 = vadd.xlane.f32.xlu1 %v309_v57  ;;  %v512_v56 = vand.u32 65535, %v427_v39  ;;  %v672_v57 = vand.u32 65535, %v587_v44 }
  0x83   : > { %v514_v58 = vcvt.s32.f32 %v512_v56  ;;  %v674_v59 = vcvt.s32.f32 %v672_v57 }
  0x85   : > { %456 = vadd.xlane.f32.xlu0 %v454_v61  ;;  %482 = vadd.xlane.f32.xlu1 %v479_v62 }
  0x89   : > { %616 = vadd.xlane.f32.xlu0 %v614_v5  ;;  %642 = vadd.xlane.f32.xlu1 %v639_v6 }
  0x8d   : > { %298 = vadd.xlane.f32.xlu0 %v296_v10  ;;  %324 = vadd.xlane.f32.xlu1 %v321_v11  ;;  %v355_v10 = vand.u32 127, %v354_v7 }
  0x8f   : > { %v1404_v22 = vsub.s32 %v355_v10, %v357_v14 }
  0x91   : > { %468 = vadd.xlane.f32.xlu0 %v466_v15  ;;  %494 = vadd.xlane.f32.xlu1 %v491_v16 }
  0x95   : > { %628 = vadd.xlane.f32.xlu0 %v626_v20  ;;  %654 = vadd.xlane.f32.xlu1 %v651_v21 }
  0x99   : > { %310 = vadd.xlane.f32.xlu0 %v308_v25  ;;  %336 = vadd.xlane.f32.xlu1 %v333_v26 }
  0x9d   : > { %480 = vadd.xlane.f32.xlu0 %v478_v30  ;;  %506 = vadd.xlane.f32.xlu1 %v503_v31 }
  0xa1   : > { %640 = vadd.xlane.f32.xlu0 %v638_v35  ;;  %666 = vadd.xlane.f32.xlu1 %v663_v36 }
  0xa5   : > { %322 = vadd.xlane.f32.xlu0 %v320_v40  ;;  %348 = vadd.xlane.f32.xlu1 %v345_v41 }
  0xa9   : > { %492 = vadd.xlane.f32.xlu0 %v490_v45  ;;  %518 = vadd.xlane.f32.xlu1 %v515_v46 }
  0xad   : > { %652 = vadd.xlane.f32.xlu0 %v650_v1  ;;  %678 = vadd.xlane.f32.xlu1 %v675_v49 }
  0xb1   : > { %334 = vadd.xlane.f32.xlu0 %v332_v52  ;;  %504 = vadd.xlane.f32.xlu1 %v502_v53 }
  0xb5   : > { %664 = vadd.xlane.f32.xlu0 %v662_v0  ;;  %346 = vadd.xlane.f32.xlu1 %v344_v2 }
  0xb9   : > { %516 = vadd.xlane.f32.xlu0 %v514_v58  ;;  %676 = vadd.xlane.f32.xlu1 %v674_v59 }
  0xea   : > { %v595_v60 = vpop.xlane.xlu0 %594  ;;  %v435_v61 = vpop.xlane.xlu1 %434 }
  0xeb   : > { %v437_v17 = vcvt.f32.s32 %v435_v61  ;;  %v597_v33 = vcvt.f32.s32 %v595_v60 }
  0xed   : > { %v438_v25 = vshll.u32 %v437_v17, 16  ;;  %v598_v43 = vshll.u32 %v597_v33, 16 }
  0xee   : > { %v447_v62 = vpop.xlane.xlu1 %446  ;;  %v265_v63 = vpop.xlane.xlu0 %264 }
  0xef   : > { %v267_v8 = vcvt.f32.s32 %v265_v63  ;;  %v449_v18 = vcvt.f32.s32 %v447_v62 }
  0xf1   : > { %v268_v12 = vshll.u32 %v267_v8, 16  ;;  %v450_v26 = vshll.u32 %v449_v18, 16 }
  0xf2   : > { %v607_v3 = vpop.xlane.xlu1 %606  ;;  %v277_v4 = vpop.xlane.xlu0 %276 }
  0xf3   : > { %v279_v13 = vcvt.f32.s32 %v277_v4  ;;  %v609_v39 = vcvt.f32.s32 %v607_v3 }
  0xf5   : > { %v280_v21 = vshll.u32 %v279_v13, 16  ;;  %v610_v47 = vshll.u32 %v609_v39, 16 }
  0xf6   : > { %v459_v5 = vpop.xlane.xlu1 %458  ;;  %v289_v6 = vpop.xlane.xlu0 %288 }
  0xf7   : > { %v291_v48 = vcvt.f32.s32 %v289_v6  ;;  %v461_v51 = vcvt.f32.s32 %v459_v5 }
  0xf9   : > { %v292_v54 = vshll.u32 %v291_v48, 16  ;;  %v462_v60 = vshll.u32 %v461_v51, 16 }
  0xfa   : > { %v1402_v9 = vpop.xlane.xlu0 %618  ;;  %v263_v11 = vpop.xlane.xlu1 %262 }
  0xfb   : > { %v266_v15 = vcvt.f32.s32 %v263_v11  ;;  %v621_v61 = vcvt.f32.s32 %v1402_v9 }
  0xfd   : > { %v269_v16 = vadd.s32 %v268_v12, %v266_v15  ;;  %v622_v7 = vshll.u32 %v621_v61, 16 }
  0xfe   : > { %v275_v19 = vpop.xlane.xlu0 %274  ;;  %v301_v20 = vpop.xlane.xlu1 %300 }
  0xff   : > { %v278_v23 = vcvt.f32.s32 %v275_v19  ;;  %v359_v29 = vrot.slane %v269_v16, %v1404_v22  ;;  %v303_v8 = vcvt.f32.s32 %v301_v20 }
 0x101   : > { %v281_v24 = vadd.s32 %v280_v21, %v278_v23  ;;  %v304_v16 = vshll.u32 %v303_v8, 16 }
 0x102   : > { %v433_v27 = vpop.xlane.xlu0 %432  ;;  %v445_v28 = vpop.xlane.xlu1 %444 }
 0x103   : > { %v363_v30 = vrot.slane %v281_v24, %v1404_v22  ;;  %v436_v31 = vcvt.f32.s32 %v433_v27  ;;  %v448_v32 = vcvt.f32.s32 %v445_v28 }
 0x105   : > { %v389_v34 = vsel %vm388_vm8, %v363_v30, %v359_v29  ;;  %v439_v35 = vadd.s32 %v438_v25, %v436_v31  ;;  %v451_v36 = vadd.s32 %v450_v26, %v448_v32 }
 0x106   : > { %v1409_v37 = vpop.xlane.xlu0 %470  ;;  %v593_v38 = vpop.xlane.xlu1 %592 }
 0x107   : > { %v527_v40 = vrot.slane %v439_v35, %v1404_v22  ;;  %v531_v41 = vrot.slane %v451_v36, %v1404_v22  ;;  %v596_v42 = vcvt.f32.s32 %v593_v38  ;;  %v473_v33 = vcvt.f32.s32 %v1409_v37 }
 0x109   : > { %v556_v44 = vsel %vm388_vm8, %v531_v41, %v527_v40  ;;  %v599_v1 = vadd.s32 %v598_v43, %v596_v42  ;;  %v474_v38 = vshll.u32 %v473_v33, 16 }
 0x10a   : > { %v605_v45 = vpop.xlane.xlu0 %604  ;;  %v1414_v46 = vpop.xlane.xlu1 %630 }
 0x10b   : > { %v608_v49 = vcvt.f32.s32 %v605_v45  ;;  %v687_v55 = vrot.slane %v599_v1, %v1404_v22  ;;  %v633_v39 = vcvt.f32.s32 %v1414_v46 }
 0x10d   : > { %v611_v50 = vadd.s32 %v610_v47, %v608_v49  ;;  %v634_v48 = vshll.u32 %v633_v39, 16 }
 0x10e   : > { %v287_v52 = vpop.xlane.xlu0 %286  ;;  %v1416_v53 = vpop.xlane.xlu1 %312 }
 0x10f   : > { %v691_v0 = vrot.slane %v611_v50, %v1404_v22  ;;  %v290_v2 = vcvt.f32.s32 %v287_v52  ;;  %v315_v43 = vcvt.f32.s32 %v1416_v53 }
 0x111   : > { %v716_v56 = vsel %vm388_vm8, %v691_v0, %v687_v55  ;;  %v293_v57 = vadd.s32 %v292_v54, %v290_v2  ;;  %v316_v52 = vshll.u32 %v315_v43, 16 }
 0x112   : > { %v457_v58 = vpop.xlane.xlu0 %456  ;;  %v483_v59 = vpop.xlane.xlu1 %482 }
 0x113   : > { %v367_v62 = vrot.slane %v293_v57, %v1404_v22  ;;  %v460_v63 = vcvt.f32.s32 %v457_v58 }
 0x115   : > { %v391_v3 = vsel %vm390_vm9, %v367_v62, %v389_v34  ;;  %v463_v4 = vadd.s32 %v462_v60, %v460_v63 }
 0x116   : > { %v617_v5 = vpop.xlane.xlu0 %616  ;;  %v643_v6 = vpop.xlane.xlu1 %642 }
 0x117   : > { %v535_v10 = vrot.slane %v463_v4, %v1404_v22  ;;  %v620_v11 = vcvt.f32.s32 %v617_v5  ;;  %v645_v45 = vcvt.f32.s32 %v643_v6 }
 0x119   : > { %v557_v12 = vsel %vm390_vm9, %v535_v10, %v556_v44  ;;  %v623_v13 = vadd.s32 %v622_v7, %v620_v11  ;;  %v485_v44 = vcvt.f32.s32 %v483_v59  ;;  %v646_v55 = vshll.u32 %v645_v45, 16 }
 0x11a   : > { %v299_v14 = vpop.xlane.xlu0 %298  ;;  %v325_v15 = vpop.xlane.xlu1 %324 }
 0x11b   : > { %v695_v9 = vrot.slane %v623_v13, %v1404_v22  ;;  %v302_v17 = vcvt.f32.s32 %v299_v14  ;;  %v327_v47 = vcvt.f32.s32 %v325_v15  ;;  %v486_v54 = vshll.u32 %v485_v44, 16 }
 0x11d   : > { %v1428_v18 = vsel %vm390_vm9, %v695_v9, %v716_v56  ;;  %v305_v19 = vadd.s32 %v304_v16, %v302_v17  ;;  %v328_v0 = vshll.u32 %v327_v47, 16 }
 0x11e   : > { %v469_v21 = vpop.xlane.xlu0 %468  ;;  %v495_v23 = vpop.xlane.xlu1 %494 }
 0x11f   : > { %v371_v20 = vrot.slane %v305_v19, %v1404_v22  ;;  %v472_v34 = vcvt.f32.s32 %v469_v21  ;;  %v497_v49 = vcvt.f32.s32 %v495_v23 }
 0x121   : > { %v1432_v24 = vsel %vm392_vm10, %v371_v20, %v391_v3  ;;  %v475_v40 = vadd.s32 %v474_v38, %v472_v34  ;;  %v498_v62 = vshll.u32 %v497_v49, 16 }
 0x122   : > { %v629_v25 = vpop.xlane.xlu0 %628  ;;  %v655_v26 = vpop.xlane.xlu1 %654 }
 0x123   : > { %v539_v1 = vrot.slane %v475_v40, %v1404_v22  ;;  %v632_v37 = vcvt.f32.s32 %v629_v25  ;;  %v657_v46 = vcvt.f32.s32 %v655_v26 }
 0x125   : > { %v558_v61 = vsel %vm392_vm10, %v539_v1, %v557_v12  ;;  %v635_v63 = vadd.s32 %v634_v48, %v632_v37  ;;  %v658_v6 = vshll.u32 %v657_v46, 16 }
 0x126   : > { %v311_v27 = vpop.xlane.xlu0 %310  ;;  %v337_v28 = vpop.xlane.xlu1 %336 }
 0x127   : > { %v314_v2 = vcvt.f32.s32 %v311_v27  ;;  %v339_v56 = vcvt.f32.s32 %v337_v28 }
 0x129   : > { %v317_v11 = vadd.s32 %v316_v52, %v314_v2  ;;  %v340_v13 = vshll.u32 %v339_v56, 16 }
 0x12a   : > { %v481_v29 = vpop.xlane.xlu0 %480  ;;  %v507_v30 = vpop.xlane.xlu1 %506 }
 0x12b   : > { %v484_v57 = vcvt.f32.s32 %v481_v29  ;;  %v509_v53 = vcvt.f32.s32 %v507_v30 }
 0x12d   : > { %v487_v14 = vadd.s32 %v486_v54, %v484_v57  ;;  %v510_v16 = vshll.u32 %v509_v53, 16 }
 0x12e   : > { %v641_v31 = vpop.xlane.xlu0 %640  ;;  %v667_v32 = vpop.xlane.xlu1 %666 }
 0x12f   : > { %v644_v58 = vcvt.f32.s32 %v641_v31  ;;  %v669_v59 = vcvt.f32.s32 %v667_v32  ;;  %v699_v31 = vrot.slane %v635_v63, %v1404_v22  ;;  %v375_v32 = vrot.slane %v317_v11, %v1404_v22 }
 0x130   : > { %v543_v33 = vrot.slane %v487_v14, %v1404_v22 }
 0x131   : > { %v647_v9 = vadd.s32 %v646_v55, %v644_v58  ;;  %v670_v17 = vshll.u32 %v669_v59, 16  ;;  %v718_v37 = vsel %vm392_vm10, %v699_v31, %v1428_v18 }
 0x132   : > { %v323_v35 = vpop.xlane.xlu0 %322  ;;  %v349_v36 = vpop.xlane.xlu1 %348  ;;  %v559_v54 = vsel %vm394_vm11, %v543_v33, %v558_v61 }
 0x133   : > { %v326_v60 = vcvt.f32.s32 %v323_v35  ;;  %v351_v7 = vcvt.f32.s32 %v349_v36  ;;  %v703_v35 = vrot.slane %v647_v9, %v1404_v22 }
 0x135   : > { %v329_v12 = vadd.s32 %v328_v0, %v326_v60  ;;  %v352_v27 = vshll.u32 %v351_v7, 16  ;;  %v719_v2 = vsel %vm394_vm11, %v703_v35, %v718_v37 }
 0x136   : > { %v493_v41 = vpop.xlane.xlu0 %492  ;;  %v1436_v42 = vpop.xlane.xlu1 %518 }
 0x137   : > { %v496_v3 = vcvt.f32.s32 %v493_v41  ;;  %v521_v21 = vcvt.f32.s32 %v1436_v42  ;;  %v379_v36 = vrot.slane %v329_v12, %v1404_v22 }
 0x139   : > { %v499_v19 = vadd.s32 %v498_v62, %v496_v3  ;;  %v522_v41 = vshll.u32 %v521_v21, 16 }
 0x13a   : > { %v653_v50 = vpop.xlane.xlu0 %652  ;;  %v679_v51 = vpop.xlane.xlu1 %678 }
 0x13b   : > { %v656_v8 = vcvt.f32.s32 %v653_v50  ;;  %v681_v23 = vcvt.f32.s32 %v679_v51  ;;  %v547_v40 = vrot.slane %v499_v19, %v1404_v22  ;;  %v395_v50 = vsel %vm394_vm11, %v375_v32, %v1432_v24 }
 0x13c   : > { %v397_v0 = vsel %vm396_vm12, %v379_v36, %v395_v50 }
 0x13d   : > { %v659_v28 = vadd.s32 %v658_v6, %v656_v8  ;;  %v682_v42 = vshll.u32 %v681_v23, 16  ;;  %v560_v56 = vsel %vm396_vm12, %v547_v40, %v559_v54 }
 0x13e   : > { %v335_v4 = vpop.xlane.xlu0 %334  ;;  %v505_v5 = vpop.xlane.xlu1 %504 }
 0x13f   : > { %v338_v10 = vcvt.f32.s32 %v335_v4  ;;  %v508_v15 = vcvt.f32.s32 %v505_v5  ;;  %v707_v47 = vrot.slane %v659_v28, %v1404_v22 }
 0x141   : > { %v341_v20 = vadd.s32 %v340_v13, %v338_v10  ;;  %v511_v34 = vadd.s32 %v510_v16, %v508_v15  ;;  %v720_v53 = vsel %vm396_vm12, %v707_v47, %v719_v2 }
 0x142   : > { %v665_v25 = vpop.xlane.xlu0 %664  ;;  %v347_v26 = vpop.xlane.xlu1 %346 }
 0x143   : > { %v668_v29 = vcvt.f32.s32 %v665_v25  ;;  %v350_v30 = vcvt.f32.s32 %v347_v26  ;;  %v383_v43 = vrot.slane %v341_v20, %v1404_v22  ;;  %v551_v51 = vrot.slane %v511_v34, %v1404_v22 }
 0x145   : > { %v671_v38 = vadd.s32 %v670_v17, %v668_v29  ;;  %v353_v39 = vadd.s32 %v352_v27, %v350_v30  ;;  %v399_v18 = vsel %vm398_vm13, %v383_v43, %v397_v0  ;;  %v561_v59 = vsel %vm398_vm13, %v551_v51, %v560_v56 }
 0x146   : > { %v517_v44 = vpop.xlane.xlu0 %516  ;;  %v677_v45 = vpop.xlane.xlu1 %676 }
 0x147   : > { %v387_v48 = vrot.slane %v353_v39, %v1404_v22  ;;  %v520_v1 = vcvt.f32.s32 %v517_v44  ;;  %v680_v49 = vcvt.f32.s32 %v677_v45  ;;  %v711_v52 = vrot.slane %v671_v38, %v1404_v22 }
 0x149   : > { %v523_v55 = vadd.s32 %v522_v41, %v520_v1  ;;  %v683_v46 = vadd.s32 %v682_v42, %v680_v49  ;;  %v401_v58 = vsel %vm400_vm14, %v387_v48, %v399_v18  ;;  %v721_v60 = vsel %vm398_vm13, %v711_v52, %v720_v53 }
 0x14a   : > { %v403_v4 = vsel %vm402_vm15, %v401_v58, 0 }
 0x14b   : > { %v555_v57 = vrot.slane %v523_v55, %v1404_v22  ;;  %v715_v24 = vrot.slane %v683_v46, %v1404_v22  ;;  %v404_v22 = vand.u32 65535, %v403_v4  ;;  %v405_v10 = vshrl.u32 %v403_v4, 16 }
 0x14d   : > { %v562_v61 = vsel %vm400_vm14, %v555_v57, %v561_v59  ;;  %v722_v62 = vsel %vm400_vm14, %v715_v24, %v721_v60  ;;  %v406_v11 = vcvt.s32.f32 %v404_v22  ;;  %v407_v13 = vcvt.s32.f32 %v405_v10 }
 0x14e   : > { %v563_v63 = vsel %vm402_vm15, %v562_v61, 0  ;;  %v723_v3 = vsel %vm402_vm15, %v722_v62, 0 }
 0x14f   : > { %v565_v5 = vshrl.u32 %v563_v63, 16  ;;  %v725_v6 = vshrl.u32 %v723_v3, 16  ;;  %v564_v14 = vand.u32 65535, %v563_v63  ;;  %v724_v15 = vand.u32 65535, %v723_v3 }
 0x151   : > { %v567_v7 = vcvt.s32.f32 %v565_v5  ;;  %v727_v8 = vcvt.s32.f32 %v725_v6  ;;  %v566_v16 = vcvt.s32.f32 %v564_v14  ;;  %v726_v9 = vcvt.s32.f32 %v724_v15 }
 0x153   : > { %570 = vadd.xlane.f32.xlu1 %v567_v7  ;;  %730 = vadd.xlane.f32.xlu0 %v727_v8 }
 0x157   : > { %408 = vadd.xlane.f32.xlu1 %v406_v11  ;;  %410 = vadd.xlane.f32.xlu0 %v407_v13 }
 0x15b   : > { %568 = vadd.xlane.f32.xlu0 %v566_v16  ;;  %728 = vadd.xlane.f32.xlu1 %v726_v9 }
 0x1e0   : > { %v731_v17 = vpop.xlane.xlu0 %730  ;;  %v571_v12 = vpop.xlane.xlu1 %570 }
 0x1e1   : > { %v733_v19 = vcvt.f32.s32 %v731_v17  ;;  %v573_v20 = vcvt.f32.s32 %v571_v12 }
 0x1e3   : > { %v734_v28 = vshll.u32 %v733_v19, 16  ;;  %v574_v31 = vshll.u32 %v573_v20, 16 }
 0x1e4   : > { %v411_v21 = vpop.xlane.xlu0 %410  ;;  %v409_v23 = vpop.xlane.xlu1 %408 }
 0x1e5   : > { %v413_v25 = vcvt.f32.s32 %v411_v21  ;;  %v412_v27 = vcvt.f32.s32 %v409_v23 }
 0x1e7   : > { %v414_v26 = vshll.u32 %v413_v25, 16 }
 0x1e8   : > { %v569_v29 = vpop.xlane.xlu0 %568  ;;  %v729_v30 = vpop.xlane.xlu1 %728 }
 0x1e9   : > { %v415_v32 = vadd.s32 %v414_v26, %v412_v27  ;;  %v572_v33 = vcvt.f32.s32 %v569_v29  ;;  %v732_v34 = vcvt.f32.s32 %v729_v30 }
 0x1eb   : > { %v575_v35 = vadd.s32 %v574_v31, %v572_v33  ;;  %v735_v36 = vadd.s32 %v734_v28, %v732_v34  ;;  %417 = vst [vmem:[%s213_s19] sm:$0xff] %v415_v32 }
 0x1ed   : > { %870 = vst [vmem:[%s213_s19 + $0x8] sm:$0xff] %v575_v35  ;;  %872 = vst [vmem:[%s213_s19 + $0x10] sm:$0xff] %v735_v36 }
 0x1ee   : > { %1021 = shalt.err (!%p1018_p2)
}
 0x1ef   : > { %s1022_s8 = scalar_lea.hbm %s1475_s28, 384  ;;  %s1026_s6 = scalar_lea.hbm %s1528_s2, 768 }
 0x1f0   : > { %p1023_p9 = scmp.ne.s32.totalorder %s1475_s28, %s1022_s8  ;;  %p1027_p6 = scmp.lt.u32.totalorder %s1475_s28, %s1528_s2 }
 0x1f1   : > { %p1028_p13 = scmp.lt.u32.totalorder %s1026_s6, %s1022_s8  ;;  %p1030_p8 = scmp.lt.u32.totalorder %s1022_s8, %s1475_s28 }
 0x1f2   : > { %p1024_p11 = pnand %p1023_p9, %p1543_p0 }
 0x1f3   : > { %p1029_p5 = por %p1028_p13, %p1027_p6 }
 0x1f4   : > { %p1025_p3 = pneg %p1024_p11 }
 0x1f5   : > { %p1031_p7 = por %p1030_p8, %p1029_p5 }
 0x1f7   : > { %p1032_p4 = pnand %p1031_p7, %p1025_p3 }
 0x1f9   : > { %1035 = shalt.err (!%p1032_p4)
}
 0x1fa   : > { %s1100_s21 = smov 128   ;;  %s1101_s7 = smov 8  }
 0x1fb   : > { %882 = dma.vmem_to_hbm [thread:$0]  (%p1543_p0), %s1477_s30, 384, %s1475_s28, %s739_s12, %s1100_s21, %s1100_s21, %s1101_s7  }
 0x1fc PF: > { %s767_s19 = sand.u32 1, %s1074_s9   ;;  %p1544_p10 = scmp.ne.s32.totalorder %s1534_s24, 0 }
 0x1fd   : > { %p1545_p12 = scmp.ge.s32.totalorder %s1094_s14, 2  ;;  %s768_s20 = scalar_lea.sflag [#allocation4], %s767_s19 }
 0x1ff   : > { %p892_p1 = pnand %p1545_p12, %p1544_p10 }
 0x201   : > { %1069 = dma.done.wait (!%p892_p1), %s768_s20, 384  }
 0x202   : > { %1071 = vsyncadd (!%p892_p1), %s768_s20, 4294966912  ;;  %s21_s14 = sadd.s32 1, %s1094_s14   ;;  %s1546_s9 = smov %s1078_s10 }
 0x203   : > { %p18_p2 = scmp.ge.s32.totalorder %s21_s14, 4   ;;  %s1547_s10 = smov %s1082_s11 }
 0x204   : > { %s1548_s11 = smov %s1173_s23  ;;  %s1549_s12 = smov %s1090_s13 }
 0x205   : > { %s1550_s13 = smov %s1552_s17  ;;  %20 = sbr.rel (!%p18_p2) target bundleno = 8 (0x8), region = 92 }
 0x20c   :  { %773 = vsyncpa [#allocation3], 1 }
 0x20d   :  { %775 = vsyncpa [#allocation3 + $0x1], 1 }
 0x20e   :  { %776 = vsyncpa [#allocation6], 1 }
 0x20f   :  { %778 = vsyncpa [#allocation6 + $0x1], 1 }
 0x210   :  { %779 = vsyncpa [#allocation4], 1 }
 0x211   :  { %781 = vsyncpa [#allocation4 + $0x1], 1 }

</bundles_post_ra>
